<compile_context>
chip_gen: v5e
topology: v5e:2x2
jax: 0.10.0
libtpu: 0.0.40
codegen_flags: <defaults>
</compile_context>

<pallas_src>
import functools
import math

import jax
import jax.numpy as jnp
from jax.experimental import pallas as pl
from jax.experimental.pallas import tpu as pltpu

_LANE = 128


def _round_up(x, m):
    return (x + m - 1) // m * m


def _largest_divisor(n, candidates):
    for c in candidates:
        if n % c == 0:
            return c
    return _LANE


def _vmem_limit_bytes():
    """Generation-aware VMEM budget (leaves headroom for compiler scratch)."""
    cap = None
    try:
        info_fn = getattr(pltpu, "get_tpu_info", None)
        if info_fn is not None:
            cap = getattr(info_fn(), "vmem_capacity_bytes", None)
    except Exception:
        cap = None
    if cap is not None and cap >= 100 * 1024 * 1024:
        return 96 * 1024 * 1024  # v5e / v6e: 128 MiB physical VMEM
    return 40 * 1024 * 1024      # v7x (64 MiB per TC) or unknown: stay safe


def _choose_tiling(n):
    """Returns (n_padded, row_tile, k_tile).

    n_padded is only a multiple of 128 (no padding cliff); tiles are chosen
    as divisors of n_padded so there are never remainder tiles.
    """
    n_p = _round_up(max(n, _LANE), _LANE)
    if n_p <= 1024:
        # Whole problem fits VMEM.  Split rows in two when possible so the
        # 'parallel' row axis can shard across both TensorCores (v7x).
        row_tile = n_p // 2 if n_p >= 256 else n_p
        k_tile = n_p
    else:
        row_tile = _largest_divisor(n_p, (512, 256, 128))
        k_tile = _largest_divisor(n_p, (2048, 1024, 512, 256, 128))
    return n_p, row_tile, k_tile


# ---------------------------------------------------------------------------
# Stage 1: support = x @ W
# ---------------------------------------------------------------------------
def _support_kernel(x_ref, w_ref, sup_ref):
    sup_ref[...] = jnp.dot(
        x_ref[...], w_ref[...], preferred_element_type=jnp.float32
    ).astype(sup_ref.dtype)


def _support_kernel_ktiled(x_ref, w_ref, sup_ref, acc_ref):
    # K-tiled over in_features (only used for very wide feature dims).
    k = pl.program_id(1)
    part = jnp.dot(x_ref[...], w_ref[...], preferred_element_type=jnp.float32)

    @pl.when(k == 0)
    def _():
        acc_ref[...] = part

    @pl.when(k > 0)
    def _():
        acc_ref[...] += part

    @pl.when(k == pl.num_programs(1) - 1)
    def _():
        sup_ref[...] = acc_ref[...].astype(sup_ref.dtype)


# ---------------------------------------------------------------------------
# Stage 2: out = adj @ support   (K-tiled, accumulate directly into out_ref)
# ---------------------------------------------------------------------------
def _aggregate_kernel_single(adj_ref, sup_ref, out_ref):
    out_ref[...] = jnp.dot(
        adj_ref[...], sup_ref[...], preferred_element_type=jnp.float32
    )


def _aggregate_kernel(adj_ref, sup_ref, out_ref, *, k_tile, sup_resident):
    k = pl.program_id(1)
    if sup_resident:
        # Full support is VMEM-resident (constant index_map); slice this
        # step's K chunk.  Start is a static multiple of k_tile (>=128).
        start = pl.multiple_of(k * k_tile, k_tile)
        sup = sup_ref[pl.ds(start, k_tile), :]
    else:
        sup = sup_ref[...]
    part = jnp.dot(adj_ref[...], sup, preferred_element_type=jnp.float32)

    # out_ref is resident across the 'arbitrary' k axis (index_map (i, 0)):
    # assign on the first step, accumulate afterwards. No scratch, no zeroing.
    @pl.when(k == 0)
    def _():
        out_ref[...] = part

    @pl.when(k > 0)
    def _():
        out_ref[...] += part


def graph_convolution(x, adj, weight, *, compute_dtype=jnp.float32):
    """Pallas implementation of GraphConvolution.forward(x, adj).

    compute_dtype: dtype used for the adjacency / support operands of the
    HBM-bound aggregation matmul (and for the stage-1 MXU operands when it is
    bfloat16).  Accumulation is always float32.
    """
    n_nodes, in_features = x.shape
    out_features = weight.shape[1]
    assert adj.shape == (n_nodes, n_nodes)

    compute_dtype = jnp.dtype(compute_dtype)
    use_bf16_mxu = compute_dtype == jnp.dtype(jnp.bfloat16)
    op_dtype = jnp.bfloat16 if use_bf16_mxu else jnp.float32

    n_p, row_tile, k_tile = _choose_tiling(n_nodes)
    f_out_p = _round_up(max(out_features, _LANE), _LANE)  # lane-dense output
    n_rt = n_p // row_tile
    n_kt = n_p // k_tile
    vmem_limit = _vmem_limit_bytes()

    # ---- operand prep (pad / cast only when actually needed) ---------------
    # Zero padding is semantically neutral: padded x rows give zero support
    # rows, padded adj rows/cols contribute zeros, padded W columns give zero
    # output columns -- all sliced off at the end.
    x_p = x.astype(op_dtype)
    if n_p != n_nodes:
        x_p = jnp.pad(x_p, ((0, n_p - n_nodes), (0, 0)))

    w_p = weight.astype(op_dtype)
    if f_out_p != out_features:
        w_p = jnp.pad(w_p, ((0, 0), (0, f_out_p - out_features)))

    # Adjacency is the dominant HBM stream: don't rewrite it unless required.
    adj_p = adj
    if adj_p.dtype != compute_dtype:
        adj_p = adj_p.astype(compute_dtype)
    if n_p != n_nodes:
        adj_p = jnp.pad(adj_p, ((0, n_p - n_nodes), (0, n_p - n_nodes)))

    # ---- stage 1: dense feature transform (support = x @ W) ----------------
    if in_features <= 2048:
        support = pl.pallas_call(
            _support_kernel,
            out_shape=jax.ShapeDtypeStruct((n_p, f_out_p), compute_dtype),
            grid_spec=pltpu.PrefetchScalarGridSpec(
                num_scalar_prefetch=0,
                grid=(n_rt,),
                in_specs=[
                    pl.BlockSpec((row_tile, in_features), lambda i: (i, 0)),
                    # Weight is small and grid-invariant (constant index_map).
                    pl.BlockSpec((in_features, f_out_p), lambda i: (0, 0)),
                ],
                out_specs=pl.BlockSpec((row_tile, f_out_p), lambda i: (i, 0)),
            ),
            compiler_params=pltpu.CompilerParams(
                dimension_semantics=("parallel",),
                vmem_limit_bytes=vmem_limit,
            ),
        )(x_p, w_p)
    else:
        # Wide feature dims: K-tile over in_features so VMEM stays bounded.
        kin_tile = 512
        in_f_p = _round_up(in_features, kin_tile)
        if in_f_p != in_features:
            x_p = jnp.pad(x_p, ((0, 0), (0, in_f_p - in_features)))
            w_p = jnp.pad(w_p, ((0, in_f_p - in_features), (0, 0)))
        support = pl.pallas_call(
            _support_kernel_ktiled,
            out_shape=jax.ShapeDtypeStruct((n_p, f_out_p), compute_dtype),
            grid_spec=pltpu.PrefetchScalarGridSpec(
                num_scalar_prefetch=0,
                grid=(n_rt, in_f_p // kin_tile),
                in_specs=[
                    pl.BlockSpec((row_tile, kin_tile), lambda i, k: (i, k)),
                    pl.BlockSpec((kin_tile, f_out_p), lambda i, k: (k, 0)),
                ],
                out_specs=pl.BlockSpec((row_tile, f_out_p), lambda i, k: (i, 0)),
                scratch_shapes=[pltpu.VMEM((row_tile, f_out_p), jnp.float32)],
            ),
            compiler_params=pltpu.CompilerParams(
                dimension_semantics=("parallel", "arbitrary"),
                vmem_limit_bytes=vmem_limit,
            ),
        )(x_p, w_p)

    # ---- stage 2: neighborhood aggregation (out = adj @ support) -----------
    sup_bytes = n_p * f_out_p * compute_dtype.itemsize
    sup_resident = (n_kt > 1) and (sup_bytes <= 8 * 1024 * 1024)

    if sup_resident:
        # Fetched from HBM exactly once (constant index_map), sliced in-kernel.
        sup_spec = pl.BlockSpec((n_p, f_out_p), lambda i, k: (0, 0))
    else:
        sup_spec = pl.BlockSpec((k_tile, f_out_p), lambda i, k: (k, 0))

    if n_kt == 1:
        agg_kernel = _aggregate_kernel_single
    else:
        agg_kernel = functools.partial(
            _aggregate_kernel, k_tile=k_tile, sup_resident=sup_resident
        )

    out_p = pl.pallas_call(
        agg_kernel,
        out_shape=jax.ShapeDtypeStruct((n_p, f_out_p), jnp.float32),
        grid_spec=pltpu.PrefetchScalarGridSpec(
            num_scalar_prefetch=0,
            grid=(n_rt, n_kt),
            in_specs=[
                pl.BlockSpec((row_tile, k_tile), lambda i, k: (i, k)),
                sup_spec,
            ],
            out_specs=pl.BlockSpec((row_tile, f_out_p), lambda i, k: (i, 0)),
        ),
        compiler_params=pltpu.CompilerParams(
            # Row axis parallel (megacore sharding), K reduction arbitrary.
            dimension_semantics=("parallel", "arbitrary"),
            vmem_limit_bytes=vmem_limit,
        ),
    )(adj_p, support)

    return out_p[:n_nodes, :out_features].astype(x.dtype)


def init_params(key, in_features, out_features):
    """Deterministic re-implementation of GraphConvolution.reset_parameters()."""
    stdv = 1.0 / math.sqrt(out_features)
    k_w, k_b = jax.random.split(key)
    weight = jax.random.uniform(
        k_w, (in_features, out_features), jnp.float32, minval=-stdv, maxval=stdv
    )
    bias = jax.random.uniform(
        k_b, (out_features,), jnp.float32, minval=-stdv, maxval=stdv
    )  # NOTE: bias is defined by the module but never applied in forward().
    return weight, bias


if __name__ == "__main__":
    key = jax.random.PRNGKey(0)
    k_param, k_x, k_adj = jax.random.split(key, 3)

    n_nodes = 128
    in_features = 64
    out_features = 32

    weight, bias = init_params(k_param, in_features, out_features)

    x = jax.random.normal(k_x, (n_nodes, in_features), jnp.float32)
    # Simple dense "normalized adjacency"-like matrix (row-stochastic).
    adj_raw = jax.random.uniform(k_adj, (n_nodes, n_nodes), jnp.float32)
    adj = adj_raw / jnp.sum(adj_raw, axis=1, keepdims=True)

    # Reference (plain JAX / XLA).
    ref = adj @ (x @ weight)

    # float32 path.
    out = jax.block_until_ready(graph_convolution(x, adj, weight))
    assert out.shape == (n_nodes, out_features)
    assert jnp.allclose(out, ref, atol=2e-3, rtol=2e-3), "f32 mismatch vs reference"

    # bf16 operand path (halves the dominant HBM stream when adj is reused).
    out_bf16 = jax.block_until_ready(
        graph_convolution(x, adj, weight, compute_dtype=jnp.bfloat16)
    )
    assert out_bf16.shape == (n_nodes, out_features)
    assert jnp.allclose(out_bf16, ref, atol=5e-2, rtol=5e-2), "bf16 mismatch vs reference"

    print("KERNEL_OK")
</pallas_src>

<mosaic_0001>
module attributes {stable_mosaic.version = 11 : i64} {
  func.func @_support_kernel(%arg0: i32, %arg1: memref<128x64xf32, #tpu.memory_space<vmem>>, %arg2: memref<64x128xf32, #tpu.memory_space<vmem>>, %arg3: memref<128x128xf32, #tpu.memory_space<vmem>>) attributes {dimension_semantics = [#tpu.dimension_semantics<parallel>], iteration_bounds = array<i64: 1>, scalar_prefetch = 0 : i64, scratch_operands = 0 : i64, tpu.core_type = #tpu.core_type<tc>, window_params = [{transform_indices = @transform_0, window_bounds = array<i64: 128, 64>}, {pipeline_mode = #tpu.pipeline_mode<synchronous>, transform_indices = @transform_1, window_bounds = array<i64: 64, 128>}, {transform_indices = @transform_2, window_bounds = array<i64: 128, 128>}]} {
    %c0 = arith.constant 0 : index
    %c0_0 = arith.constant 0 : index
    %0 = vector.load %arg1[%c0, %c0_0] : memref<128x64xf32, #tpu.memory_space<vmem>>, vector<128x64xf32>
    %c0_1 = arith.constant 0 : index
    %c0_2 = arith.constant 0 : index
    %1 = vector.load %arg2[%c0_1, %c0_2] : memref<64x128xf32, #tpu.memory_space<vmem>>, vector<64x128xf32>
    %cst = arith.constant dense<0.000000e+00> : vector<128x128xf32>
    %2 = tpu.matmul %0, %1, %cst {dimension_numbers = #tpu.dot_dimension_numbers<[1], [0], [0], [1], [0, 0, 1, 1], [], []>} : vector<128x64xf32>, vector<64x128xf32>, vector<128x128xf32> -> vector<128x128xf32>
    %c0_3 = arith.constant 0 : index
    %c0_4 = arith.constant 0 : index
    %3 = vector.load %arg3[%c0_3, %c0_4] : memref<128x128xf32, #tpu.memory_space<vmem>>, vector<128x128xf32>
    tpu.vector_store %arg3[%c0_3, %c0_4], %2 {strides = array<i32>} : memref<128x128xf32, #tpu.memory_space<vmem>>, vector<128x128xf32>,
    return
  }
  func.func @transform_0(%arg0: i32) -> (i32, i32) {
    %c0_i32 = arith.constant 0 : i32
    %c0_i32_0 = arith.constant 0 : i32
    return %arg0, %c0_i32 : i32, i32
  }
  func.func @transform_1(%arg0: i32) -> (i32, i32) {
    %c0_i32 = arith.constant 0 : i32
    %c0_i32_0 = arith.constant 0 : i32
    %c0_i32_1 = arith.constant 0 : i32
    return %c0_i32, %c0_i32_0 : i32, i32
  }
  func.func @transform_2(%arg0: i32) -> (i32, i32) {
    %c0_i32 = arith.constant 0 : i32
    %c0_i32_0 = arith.constant 0 : i32
    return %arg0, %c0_i32 : i32, i32
  }
}

</mosaic_0001>

<bundles_post_ra>
// kernel: tpu_custom_call.1
= control target key start
LH: loop header
LB: loop body
LE: loop exit
PB: predicated region body
PF: predicated region fallthrough
CT: control target
= control target key end

     0   :  { %s362_s0 = inlined_call_operand.vmem [shape: f32[128,64], index: 0, kind: input, shape index: {}]   ;;  %s363_s1 = inlined_call_operand.vmem [shape: f32[64,128], index: 1, kind: input, shape index: {}]   ;;  %s364_s2 = inlined_call_operand.hbm [shape: f32[128,128], index: 2, kind: output, shape index: {}]  }
   0x1   :  { %v35_v0 = vld [vmem:[%s363_s1 + $0x38] sm:$0xff]  ;;  %v34_v1 = vld [vmem:[%s363_s1 + $0x30] sm:$0xff]  ;;  %v33_v2 = vld [vmem:[%s363_s1 + $0x28] sm:$0xff] }
   0x2   :  { %201 = vmatpush.msra.mxu2 %v35_v0  ;;  %202 = vmatpush.msra.mxu3 %v35_v0  ;;  %v32_v3 = vld [vmem:[%s363_s1 + $0x20] sm:$0xff]  ;;  %v31_v4 = vld [vmem:[%s363_s1 + $0x18] sm:$0xff] }
   0x3   :  { %93 = vmatpush.msra.mxu0 %v35_v0  ;;  %200 = vmatpush.msra.mxu1 %v35_v0 }
   0x4   :  { %204 = vmatpush.msra.mxu2 %v34_v1  ;;  %205 = vmatpush.msra.mxu3 %v34_v1 }
   0x5   :  { %94 = vmatpush.msra.mxu0 %v34_v1  ;;  %203 = vmatpush.msra.mxu1 %v34_v1 }
   0x6   :  { %207 = vmatpush.msra.mxu2 %v33_v2  ;;  %208 = vmatpush.msra.mxu3 %v33_v2 }
   0x7   :  { %95 = vmatpush.msra.mxu0 %v33_v2  ;;  %206 = vmatpush.msra.mxu1 %v33_v2 }
   0x8   :  { %210 = vmatpush.msra.mxu2 %v32_v3  ;;  %211 = vmatpush.msra.mxu3 %v32_v3 }
   0x9   :  { %7 = vsyncpa [#allocation3], 0  ;;  %v30_v5 = vld [vmem:[%s363_s1 + $0x10] sm:$0xff]  ;;  %96 = vmatpush.msra.mxu0 %v32_v3  ;;  %209 = vmatpush.msra.mxu1 %v32_v3  ;;  %v29_v6 = vld [vmem:[%s363_s1 + $0x8] sm:$0xff]  ;;  %vm36_vm0 = vcmask 523264   ;;  %s254_s3 = smov 128  }
   0xa   :  { %213 = vmatpush.msra.mxu2 %v31_v4  ;;  %214 = vmatpush.msra.mxu3 %v31_v4  ;;  %v28_v7 = vld [vmem:[%s363_s1] sm:$0xff]  ;;  %v21_v12 = vld [vmem:[%s362_s0 + $0x48] sm:$0xff]  ;;  %v22_v16 = vld [vmem:[%s362_s0 + $0x50] sm:$0xff]  ;;  %s172_s1 = sshll.u32 %s364_s2, 4  ;;  %s255_s4 = smov 8   ;;  %s173_s1 = int_to_ptr.hbm [resolvable:$true] %s172_s1 }
   0xb   :  { %97 = vmatpush.msra.mxu0 %v31_v4  ;;  %212 = vmatpush.msra.mxu1 %v31_v4  ;;  %v20_v8 = vld [vmem:[%s362_s0 + $0x40] sm:$0xff]  ;;  %v25_v13 = vld [vmem:[%s362_s0 + $0x68] sm:$0xff]  ;;  %v26_v17 = vld [vmem:[%s362_s0 + $0x70] sm:$0xff] }
   0xc   :  { %216 = vmatpush.msra.mxu2 %v30_v5  ;;  %217 = vmatpush.msra.mxu3 %v30_v5  ;;  %v24_v9 = vld [vmem:[%s362_s0 + $0x60] sm:$0xff]  ;;  %v13_v14 = vld [vmem:[%s362_s0 + $0x8] sm:$0xff]  ;;  %v14_v18 = vld [vmem:[%s362_s0 + $0x10] sm:$0xff] }
   0xd   :  { %98 = vmatpush.msra.mxu0 %v30_v5  ;;  %215 = vmatpush.msra.mxu1 %v30_v5  ;;  %v12_v10 = vld [vmem:[%s362_s0] sm:$0xff]  ;;  %v17_v15 = vld [vmem:[%s362_s0 + $0x28] sm:$0xff]  ;;  %v18_v19 = vld [vmem:[%s362_s0 + $0x30] sm:$0xff] }
   0xe   :  { %219 = vmatpush.msra.mxu2 %v29_v6  ;;  %220 = vmatpush.msra.mxu3 %v29_v6  ;;  %v16_v11 = vld [vmem:[%s362_s0 + $0x20] sm:$0xff]  ;;  %v23_v20 = vld [vmem:[%s362_s0 + $0x58] sm:$0xff] }
   0xf   :  { %99 = vmatpush.msra.mxu0 %v29_v6  ;;  %218 = vmatpush.msra.mxu1 %v29_v6  ;;  %v27_v21 = vld [vmem:[%s362_s0 + $0x78] sm:$0xff] }
  0x10   :  { %222 = vmatpush.msra.mxu2 %v28_v7  ;;  %223 = vmatpush.msra.mxu3 %v28_v7  ;;  %v15_v22 = vld [vmem:[%s362_s0 + $0x18] sm:$0xff] }
  0x11   :  { %192 = vmatmul.msk.f32.vlgmr.msra.gmra.mxu2 %vm36_vm0, %v20_v8  ;;  %196 = vmatmul.msk.f32.vlgmr.msra.gmra.mxu3 %vm36_vm0, %v24_v9  ;;  %v19_v23 = vld [vmem:[%s362_s0 + $0x38] sm:$0xff]  ;;  %s253_s0 = smov [#allocation2]  }
  0x12   :  { %100 = vmatpush.msra.mxu0 %v28_v7  ;;  %221 = vmatpush.msra.mxu1 %v28_v7  ;;  %s170_s28 = sshll.u32 %s253_s0, 4  ;;  %s171_s28 = int_to_ptr.vmem [resolvable:$true] %s170_s28 }
  0x13   :  { %184 = vmatmul.msk.f32.vlgmr.msra.gmra.mxu0 %vm36_vm0, %v12_v10  ;;  %188 = vmatmul.msk.f32.vlgmr.msra.gmra.mxu1 %vm36_vm0, %v16_v11 }
  0x19   :  { %193 = vmatmul.msk.f32.gmra.mxu2 %vm36_vm0, %v21_v12  ;;  %197 = vmatmul.msk.f32.gmra.mxu3 %vm36_vm0, %v25_v13 }
  0x1b   :  { %185 = vmatmul.msk.f32.gmra.mxu0 %vm36_vm0, %v13_v14  ;;  %189 = vmatmul.msk.f32.gmra.mxu1 %vm36_vm0, %v17_v15 }
  0x21   :  { %194 = vmatmul.msk.f32.gmra.mxu2 %vm36_vm0, %v22_v16  ;;  %198 = vmatmul.msk.f32.gmra.mxu3 %vm36_vm0, %v26_v17 }
  0x23   :  { %186 = vmatmul.msk.f32.gmra.mxu0 %vm36_vm0, %v14_v18  ;;  %190 = vmatmul.msk.f32.gmra.mxu1 %vm36_vm0, %v18_v19 }
  0x29   :  { %195 = vmatmul.msk.f32.gmra.mxu2 %vm36_vm0, %v23_v20  ;;  %199 = vmatmul.msk.f32.gmra.mxu3 %vm36_vm0, %v27_v21 }
  0x2b   :  { %187 = vmatmul.msk.f32.gmra.mxu0 %vm36_vm0, %v15_v22  ;;  %191 = vmatmul.msk.f32.gmra.mxu1 %vm36_vm0, %v19_v23 }
  0x90   :  { %v102_v24 = vpop.f32.mrf.mxu0  ;;  %v114_v25 = vpop.f32.mrf.mxu1 }
  0x91   :  { %150 = vst [vmem:[#allocation2] sm:$0xff] %v102_v24 }
  0x92   :  { %154 = vst [vmem:[#allocation2 + $0x20] sm:$0xff] %v114_v25 }
  0x94   :  { %v126_v26 = vpop.f32.mrf.mxu2  ;;  %v138_v27 = vpop.f32.mrf.mxu3 }
  0x95   :  { %158 = vst [vmem:[#allocation2 + $0x40] sm:$0xff] %v126_v26 }
  0x96   :  { %162 = vst [vmem:[#allocation2 + $0x60] sm:$0xff] %v138_v27 }
  0x98   :  { %v105_v28 = vpop.f32.mrf.mxu0  ;;  %v117_v29 = vpop.f32.mrf.mxu1 }
  0x99   :  { %151 = vst [vmem:[#allocation2 + $0x8] sm:$0xff] %v105_v28 }
  0x9a   :  { %155 = vst [vmem:[#allocation2 + $0x28] sm:$0xff] %v117_v29 }
  0x9c   :  { %v129_v30 = vpop.f32.mrf.mxu2  ;;  %v141_v31 = vpop.f32.mrf.mxu3 }
  0x9d   :  { %159 = vst [vmem:[#allocation2 + $0x48] sm:$0xff] %v129_v30 }
  0x9e   :  { %163 = vst [vmem:[#allocation2 + $0x68] sm:$0xff] %v141_v31 }
  0xa0   :  { %v108_v32 = vpop.f32.mrf.mxu0  ;;  %v120_v33 = vpop.f32.mrf.mxu1 }
  0xa1   :  { %152 = vst [vmem:[#allocation2 + $0x10] sm:$0xff] %v108_v32 }
  0xa2   :  { %156 = vst [vmem:[#allocation2 + $0x30] sm:$0xff] %v120_v33 }
  0xa4   :  { %v132_v34 = vpop.f32.mrf.mxu2  ;;  %v144_v35 = vpop.f32.mrf.mxu3 }
  0xa5   :  { %160 = vst [vmem:[#allocation2 + $0x50] sm:$0xff] %v132_v34 }
  0xa6   :  { %164 = vst [vmem:[#allocation2 + $0x70] sm:$0xff] %v144_v35 }
  0xa8   :  { %v111_v36 = vpop.f32.mrf.mxu0  ;;  %v123_v37 = vpop.f32.mrf.mxu1 }
  0xa9   :  { %153 = vst [vmem:[#allocation2 + $0x18] sm:$0xff] %v111_v36 }
  0xaa   :  { %157 = vst [vmem:[#allocation2 + $0x38] sm:$0xff] %v123_v37 }
  0xac   :  { %v135_v38 = vpop.f32.mrf.mxu2  ;;  %v147_v39 = vpop.f32.mrf.mxu3 }
  0xad   :  { %161 = vst [vmem:[#allocation2 + $0x58] sm:$0xff] %v135_v38 }
  0xae   :  { %165 = vst [vmem:[#allocation2 + $0x78] sm:$0xff] %v147_v39 }
  0xaf   :  { %178 = dma.vmem_to_hbm [thread:$0]  %s171_s28, 2048, %s173_s1, [#allocation3], %s254_s3, %s254_s3, %s255_s4  }
  0xb0   :  { %251 = dma.done.wait [#allocation3], 2048  }
  0xb1   :  { %252 = vsyncadd [#allocation3], 4294965248 }
  0xb2   :  { %183 = vsyncpa [#allocation3], 1 }

</bundles_post_ra>
